<compile_context>
chip_gen: v5e
topology: v5e:2x2
jax: 0.10.0
libtpu: 0.0.40
codegen_flags: <defaults>
</compile_context>

<pallas_src>
import jax
import jax.numpy as jnp
from jax.experimental import pallas as pl
from jax.experimental.pallas import tpu as pltpu

# Fixed conversion weights from the PyTorch module (baked in as constants).
_Y_W = (0.299, 0.587, 0.114)
_CB_W = (-0.169, -0.331, 0.5)
_CR_W = (0.5, -0.419, -0.081)

_LANE = 128
_SUB = 8


def _ycrcb_kernel(x_ref, ycrcb_ref, y_ref, crcb_ref):
    # x_ref: (3, ROWS, 128) -- R, G, B planes of one batch element, each a
    # dense (ROWS, 128) tile.
    r = x_ref[0].astype(jnp.float32)
    g = x_ref[1].astype(jnp.float32)
    b = x_ref[2].astype(jnp.float32)

    y = _Y_W[0] * r + _Y_W[1] * g + _Y_W[2] * b
    cb = _CB_W[0] * r + _CB_W[1] * g + _CB_W[2] * b + 0.5
    cr = _CR_W[0] * r + _CR_W[1] * g + _CR_W[2] * b + 0.5

    out_dt = ycrcb_ref.dtype
    y_o = y.astype(out_dt)
    cr_o = cr.astype(out_dt)
    cb_o = cb.astype(out_dt)

    # Channel order matches the module: ycrcb = [y, cr, cb], crcb = [cr, cb].
    # Direct per-plane stores (no concatenate / relayout).
    ycrcb_ref[0] = y_o
    ycrcb_ref[1] = cr_o
    ycrcb_ref[2] = cb_o
    y_ref[0] = y_o
    crcb_ref[0] = cr_o
    crcb_ref[1] = cb_o


def _pick_block_rows(rows, max_rows):
    """Pick block row count: full extent, or a multiple-of-8 divisor of rows."""
    if rows <= max_rows:
        return rows, rows  # (block_rows, rows_padded)
    start = min(max_rows, rows)
    start -= start % _SUB
    for r in range(start, _SUB - 1, -_SUB):
        if rows % r == 0:
            return r, rows
    # Rare fallback: no clean divisor -> pad rows up to a multiple of max_rows.
    rows_pad = pl.cdiv(rows, max_rows) * max_rows
    return max_rows, rows_pad


def ycrcb(img, *, max_rows=1024):
    """Forward pass of YCrCb.  img: (N, 3, H, W) NCHW.

    Returns (ycrcb, y, crcb) with shapes (N,3,H,W), (N,1,H,W), (N,2,H,W),
    matching the PyTorch module's returns.
    """
    N, C, H, W = img.shape
    assert C == 3, "YCrCb expects a 3-channel RGB input"
    HW = H * W

    # Lane-dense + sublane-dense spatial tiling: spatial dim -> (rows, 128).
    rows = pl.cdiv(HW, _LANE)
    block_rows, rows_pad = _pick_block_rows(rows, max_rows)
    hw_pad = rows_pad * _LANE

    x = img.reshape(N, 3, HW)  # just a reshape; no NCHW<->NHWC transpose
    if hw_pad != HW:
        x = jnp.pad(x, ((0, 0), (0, 0), (0, hw_pad - HW)))
    x = x.reshape(N, 3, rows_pad, _LANE)

    grid = (N, rows_pad // block_rows)
    out_shape = (
        jax.ShapeDtypeStruct((N, 3, rows_pad, _LANE), img.dtype),
        jax.ShapeDtypeStruct((N, 1, rows_pad, _LANE), img.dtype),
        jax.ShapeDtypeStruct((N, 2, rows_pad, _LANE), img.dtype),
    )
    in_specs = [pl.BlockSpec((None, 3, block_rows, _LANE),
                             lambda n, t: (n, 0, t, 0))]
    out_specs = (
        pl.BlockSpec((None, 3, block_rows, _LANE), lambda n, t: (n, 0, t, 0)),
        pl.BlockSpec((None, 1, block_rows, _LANE), lambda n, t: (n, 0, t, 0)),
        pl.BlockSpec((None, 2, block_rows, _LANE), lambda n, t: (n, 0, t, 0)),
    )
    itemsize = jnp.dtype(img.dtype).itemsize
    cost = pl.CostEstimate(
        flops=17 * N * HW,                           # 9 mul + 8 add / pixel
        transcendentals=0,
        bytes_accessed=(3 + 6) * N * hw_pad * itemsize,  # read 3 ch, write 6 ch
    )

    ycrcb_p, y_p, crcb_p = pl.pallas_call(
        _ycrcb_kernel,
        out_shape=out_shape,
        grid=grid,
        in_specs=in_specs,
        out_specs=out_specs,
        compiler_params=pltpu.CompilerParams(
            dimension_semantics=("parallel", "parallel")),
        cost_estimate=cost,
    )(x)

    def _unpack(o, c):
        o = o.reshape(N, c, hw_pad)
        if hw_pad != HW:
            o = o[:, :, :HW]
        return o.reshape(N, c, H, W)

    return _unpack(ycrcb_p, 3), _unpack(y_p, 1), _unpack(crcb_p, 2)


if __name__ == "__main__":
    key = jax.random.PRNGKey(0)
    img = jax.random.uniform(key, (2, 3, 16, 16), dtype=jnp.float32)

    ycrcb_out, y_out, crcb_out = ycrcb(img)
    jax.block_until_ready((ycrcb_out, y_out, crcb_out))

    # Pure-JAX reference check of the module semantics.
    wy = jnp.array(_Y_W, jnp.float32).reshape(1, 3, 1, 1)
    wcb = jnp.array(_CB_W, jnp.float32).reshape(1, 3, 1, 1)
    wcr = jnp.array(_CR_W, jnp.float32).reshape(1, 3, 1, 1)
    y_exp = jnp.sum(img * wy, axis=1, keepdims=True)
    cb_exp = jnp.sum(img * wcb, axis=1, keepdims=True) + 0.5
    cr_exp = jnp.sum(img * wcr, axis=1, keepdims=True) + 0.5
    ycrcb_exp = jnp.concatenate([y_exp, cr_exp, cb_exp], axis=1)
    crcb_exp = jnp.concatenate([cr_exp, cb_exp], axis=1)

    assert ycrcb_out.shape == (2, 3, 16, 16)
    assert y_out.shape == (2, 1, 16, 16)
    assert crcb_out.shape == (2, 2, 16, 16)
    assert jnp.allclose(ycrcb_out, ycrcb_exp, atol=1e-6)
    assert jnp.allclose(y_out, y_exp, atol=1e-6)
    assert jnp.allclose(crcb_out, crcb_exp, atol=1e-6)
    print("KERNEL_OK")
</pallas_src>

<mosaic_0001>
module attributes {stable_mosaic.version = 11 : i64} {
  func.func @_ycrcb_kernel(%arg0: i32, %arg1: i32, %arg2: memref<1x3x2x128xf32, #tpu.memory_space<vmem>>, %arg3: memref<1x3x2x128xf32, #tpu.memory_space<vmem>>, %arg4: memref<1x1x2x128xf32, #tpu.memory_space<vmem>>, %arg5: memref<1x2x2x128xf32, #tpu.memory_space<vmem>>) attributes {dimension_semantics = [#tpu.dimension_semantics<parallel>, #tpu.dimension_semantics<parallel>], iteration_bounds = array<i64: 2, 1>, scalar_prefetch = 0 : i64, scratch_operands = 0 : i64, tpu.core_type = #tpu.core_type<tc>, window_params = [{transform_indices = @transform_0, window_bounds = array<i64: 1, 3, 2, 128>}, {transform_indices = @transform_1, window_bounds = array<i64: 1, 3, 2, 128>}, {transform_indices = @transform_2, window_bounds = array<i64: 1, 1, 2, 128>}, {transform_indices = @transform_3, window_bounds = array<i64: 1, 2, 2, 128>}]} {
    %c0 = arith.constant 0 : index
    %c0_0 = arith.constant 0 : index
    %c0_1 = arith.constant 0 : index
    %c0_2 = arith.constant 0 : index
    %0 = vector.load %arg2[%c0, %c0_0, %c0_1, %c0_2] : memref<1x3x2x128xf32, #tpu.memory_space<vmem>>, vector<1x1x2x128xf32>
    %1 = vector.shape_cast %0 : vector<1x1x2x128xf32> to vector<2x128xf32>
    %c0_3 = arith.constant 0 : index
    %c1 = arith.constant 1 : index
    %c0_4 = arith.constant 0 : index
    %c0_5 = arith.constant 0 : index
    %2 = vector.load %arg2[%c0_3, %c1, %c0_4, %c0_5] : memref<1x3x2x128xf32, #tpu.memory_space<vmem>>, vector<1x1x2x128xf32>
    %3 = vector.shape_cast %2 : vector<1x1x2x128xf32> to vector<2x128xf32>
    %c0_6 = arith.constant 0 : index
    %c2 = arith.constant 2 : index
    %c0_7 = arith.constant 0 : index
    %c0_8 = arith.constant 0 : index
    %4 = vector.load %arg2[%c0_6, %c2, %c0_7, %c0_8] : memref<1x3x2x128xf32, #tpu.memory_space<vmem>>, vector<1x1x2x128xf32>
    %5 = vector.shape_cast %4 : vector<1x1x2x128xf32> to vector<2x128xf32>
    %cst = arith.constant 2.990000e-01 : f32
    %6 = vector.broadcast %cst : f32 to vector<2x128xf32>
    %7 = arith.mulf %6, %1 : vector<2x128xf32>
    %cst_9 = arith.constant 5.870000e-01 : f32
    %8 = vector.broadcast %cst_9 : f32 to vector<2x128xf32>
    %9 = arith.mulf %8, %3 : vector<2x128xf32>
    %10 = arith.addf %7, %9 : vector<2x128xf32>
    %cst_10 = arith.constant 1.140000e-01 : f32
    %11 = vector.broadcast %cst_10 : f32 to vector<2x128xf32>
    %12 = arith.mulf %11, %5 : vector<2x128xf32>
    %13 = arith.addf %10, %12 : vector<2x128xf32>
    %cst_11 = arith.constant -1.690000e-01 : f32
    %14 = vector.broadcast %cst_11 : f32 to vector<2x128xf32>
    %15 = arith.mulf %14, %1 : vector<2x128xf32>
    %cst_12 = arith.constant -3.310000e-01 : f32
    %16 = vector.broadcast %cst_12 : f32 to vector<2x128xf32>
    %17 = arith.mulf %16, %3 : vector<2x128xf32>
    %18 = arith.addf %15, %17 : vector<2x128xf32>
    %cst_13 = arith.constant 5.000000e-01 : f32
    %19 = vector.broadcast %cst_13 : f32 to vector<2x128xf32>
    %20 = arith.mulf %19, %5 : vector<2x128xf32>
    %21 = arith.addf %18, %20 : vector<2x128xf32>
    %cst_14 = arith.constant 5.000000e-01 : f32
    %22 = vector.broadcast %cst_14 : f32 to vector<2x128xf32>
    %23 = arith.addf %21, %22 : vector<2x128xf32>
    %cst_15 = arith.constant 5.000000e-01 : f32
    %24 = vector.broadcast %cst_15 : f32 to vector<2x128xf32>
    %25 = arith.mulf %24, %1 : vector<2x128xf32>
    %cst_16 = arith.constant -4.190000e-01 : f32
    %26 = vector.broadcast %cst_16 : f32 to vector<2x128xf32>
    %27 = arith.mulf %26, %3 : vector<2x128xf32>
    %28 = arith.addf %25, %27 : vector<2x128xf32>
    %cst_17 = arith.constant -8.100000e-02 : f32
    %29 = vector.broadcast %cst_17 : f32 to vector<2x128xf32>
    %30 = arith.mulf %29, %5 : vector<2x128xf32>
    %31 = arith.addf %28, %30 : vector<2x128xf32>
    %cst_18 = arith.constant 5.000000e-01 : f32
    %32 = vector.broadcast %cst_18 : f32 to vector<2x128xf32>
    %33 = arith.addf %31, %32 : vector<2x128xf32>
    %c0_19 = arith.constant 0 : index
    %c0_20 = arith.constant 0 : index
    %c0_21 = arith.constant 0 : index
    %c0_22 = arith.constant 0 : index
    %34 = vector.load %arg3[%c0_19, %c0_20, %c0_21, %c0_22] : memref<1x3x2x128xf32, #tpu.memory_space<vmem>>, vector<1x1x2x128xf32>
    %35 = vector.shape_cast %34 : vector<1x1x2x128xf32> to vector<2x128xf32>
    %36 = vector.shape_cast %13 : vector<2x128xf32> to vector<1x1x2x128xf32>
    tpu.vector_store %arg3[%c0_19, %c0_20, %c0_21, %c0_22], %36 {strides = array<i32>} : memref<1x3x2x128xf32, #tpu.memory_space<vmem>>, vector<1x1x2x128xf32>,
    %c0_23 = arith.constant 0 : index
    %c1_24 = arith.constant 1 : index
    %c0_25 = arith.constant 0 : index
    %c0_26 = arith.constant 0 : index
    %37 = vector.load %arg3[%c0_23, %c1_24, %c0_25, %c0_26] : memref<1x3x2x128xf32, #tpu.memory_space<vmem>>, vector<1x1x2x128xf32>
    %38 = vector.shape_cast %37 : vector<1x1x2x128xf32> to vector<2x128xf32>
    %39 = vector.shape_cast %33 : vector<2x128xf32> to vector<1x1x2x128xf32>
    tpu.vector_store %arg3[%c0_23, %c1_24, %c0_25, %c0_26], %39 {strides = array<i32>} : memref<1x3x2x128xf32, #tpu.memory_space<vmem>>, vector<1x1x2x128xf32>,
    %c0_27 = arith.constant 0 : index
    %c2_28 = arith.constant 2 : index
    %c0_29 = arith.constant 0 : index
    %c0_30 = arith.constant 0 : index
    %40 = vector.load %arg3[%c0_27, %c2_28, %c0_29, %c0_30] : memref<1x3x2x128xf32, #tpu.memory_space<vmem>>, vector<1x1x2x128xf32>
    %41 = vector.shape_cast %40 : vector<1x1x2x128xf32> to vector<2x128xf32>
    %42 = vector.shape_cast %23 : vector<2x128xf32> to vector<1x1x2x128xf32>
    tpu.vector_store %arg3[%c0_27, %c2_28, %c0_29, %c0_30], %42 {strides = array<i32>} : memref<1x3x2x128xf32, #tpu.memory_space<vmem>>, vector<1x1x2x128xf32>,
    %c0_31 = arith.constant 0 : index
    %c0_32 = arith.constant 0 : index
    %c0_33 = arith.constant 0 : index
    %c0_34 = arith.constant 0 : index
    %43 = vector.load %arg4[%c0_31, %c0_32, %c0_33, %c0_34] : memref<1x1x2x128xf32, #tpu.memory_space<vmem>>, vector<1x1x2x128xf32>
    %44 = vector.shape_cast %43 : vector<1x1x2x128xf32> to vector<2x128xf32>
    %45 = vector.shape_cast %13 : vector<2x128xf32> to vector<1x1x2x128xf32>
    tpu.vector_store %arg4[%c0_31, %c0_32, %c0_33, %c0_34], %45 {strides = array<i32>} : memref<1x1x2x128xf32, #tpu.memory_space<vmem>>, vector<1x1x2x128xf32>,
    %c0_35 = arith.constant 0 : index
    %c0_36 = arith.constant 0 : index
    %c0_37 = arith.constant 0 : index
    %c0_38 = arith.constant 0 : index
    %46 = vector.load %arg5[%c0_35, %c0_36, %c0_37, %c0_38] : memref<1x2x2x128xf32, #tpu.memory_space<vmem>>, vector<1x1x2x128xf32>
    %47 = vector.shape_cast %46 : vector<1x1x2x128xf32> to vector<2x128xf32>
    %48 = vector.shape_cast %33 : vector<2x128xf32> to vector<1x1x2x128xf32>
    tpu.vector_store %arg5[%c0_35, %c0_36, %c0_37, %c0_38], %48 {strides = array<i32>} : memref<1x2x2x128xf32, #tpu.memory_space<vmem>>, vector<1x1x2x128xf32>,
    %c0_39 = arith.constant 0 : index
    %c1_40 = arith.constant 1 : index
    %c0_41 = arith.constant 0 : index
    %c0_42 = arith.constant 0 : index
    %49 = vector.load %arg5[%c0_39, %c1_40, %c0_41, %c0_42] : memref<1x2x2x128xf32, #tpu.memory_space<vmem>>, vector<1x1x2x128xf32>
    %50 = vector.shape_cast %49 : vector<1x1x2x128xf32> to vector<2x128xf32>
    %51 = vector.shape_cast %23 : vector<2x128xf32> to vector<1x1x2x128xf32>
    tpu.vector_store %arg5[%c0_39, %c1_40, %c0_41, %c0_42], %51 {strides = array<i32>} : memref<1x2x2x128xf32, #tpu.memory_space<vmem>>, vector<1x1x2x128xf32>,
    return
  }
  func.func @transform_0(%arg0: i32, %arg1: i32) -> (i32, i32, i32, i32) {
    %c0_i32 = arith.constant 0 : i32
    %c0_i32_0 = arith.constant 0 : i32
    %c0_i32_1 = arith.constant 0 : i32
    return %arg0, %c0_i32, %arg1, %c0_i32_0 : i32, i32, i32, i32
  }
  func.func @transform_1(%arg0: i32, %arg1: i32) -> (i32, i32, i32, i32) {
    %c0_i32 = arith.constant 0 : i32
    %c0_i32_0 = arith.constant 0 : i32
    %c0_i32_1 = arith.constant 0 : i32
    return %arg0, %c0_i32, %arg1, %c0_i32_0 : i32, i32, i32, i32
  }
  func.func @transform_2(%arg0: i32, %arg1: i32) -> (i32, i32, i32, i32) {
    %c0_i32 = arith.constant 0 : i32
    %c0_i32_0 = arith.constant 0 : i32
    %c0_i32_1 = arith.constant 0 : i32
    return %arg0, %c0_i32, %arg1, %c0_i32_0 : i32, i32, i32, i32
  }
  func.func @transform_3(%arg0: i32, %arg1: i32) -> (i32, i32, i32, i32) {
    %c0_i32 = arith.constant 0 : i32
    %c0_i32_0 = arith.constant 0 : i32
    %c0_i32_1 = arith.constant 0 : i32
    return %arg0, %c0_i32, %arg1, %c0_i32_0 : i32, i32, i32, i32
  }
}

</mosaic_0001>

<bundles_post_ra>
// kernel: tpu_custom_call.1
= control target key start
LH: loop header
LB: loop body
LE: loop exit
PB: predicated region body
PF: predicated region fallthrough
CT: control target
= control target key end

     0   :  { %s960_s0 = inlined_call_operand.hbm [shape: f32[2,3,2,128], index: 0, kind: input, shape index: {}]   ;;  %s961_s1 = inlined_call_operand.hbm [shape: f32[2,3,2,128], index: 1, kind: output, shape index: {0}]   ;;  %s962_s2 = inlined_call_operand.hbm [shape: f32[2,1,2,128], index: 2, kind: output, shape index: {1}]   ;;  %s963_s3 = inlined_call_operand.hbm [shape: f32[2,2,2,128], index: 3, kind: output, shape index: {2}]  }
   0x1   :  { %966 = sst [smem:[#allocation13_spill]] %s960_s0 }
   0x2   :  { %9 = vsyncpa [#allocation3], 0 }
   0x3   :  { %11 = vsyncpa [#allocation3 + $0x1], 0 }
   0x4   :  { %12 = vsyncpa [#allocation4], 0 }
   0x5   :  { %14 = vsyncpa [#allocation4 + $0x1], 0 }
   0x6   :  { %15 = vsyncpa [#allocation7], 0 }
   0x7   :  { %17 = vsyncpa [#allocation7 + $0x1], 0  ;;  %s772_s12 = smov 0   ;;  %s774_s13 = smov 0  }
   0x8   :  { %s776_s14 = smov 0   ;;  %s778_s15 = smov 0  }
   0x9   :  { %s780_s16 = smov 0   ;;  %s782_s17 = smov 0  }
   0xa LB: > { %s803_s18 = sadd.s32 4294967295, %s746_s17   ;;  %s964_s19 = sadd.s32 4294967294, %s746_s17   ;;  %s746_s17 = sphi %s782_s17, %s23_s17   ;;  %s742_s16 = sphi %s780_s16, %s980_s16   ;;  %s738_s15 = sphi %s778_s15, %s979_s15   ;;  %s734_s14 = sphi %s776_s14, %s978_s14   ;;  %s730_s13 = sphi %s774_s13, %s977_s13   ;;  %s726_s12 = sphi %s772_s12, %s976_s12  }
   0xb   : > { %s35_s20 = sadd.s32 1, %s742_s16  ;;  %s44_s21 = sadd.s32 1, %s734_s14 }
   0xc   : > { %p37_p0 = scmp.ge.s32.totalorder %s35_s20, 2  ;;  %p51_p1 = scmp.ne.s32.totalorder %s734_s14, %s730_s13 }
   0xd   : > { %p52_p2 = scmp.eq.s32.totalorder %s746_s17, 0  ;;  %p57_p3 = scmp.ne.s32.totalorder %s730_s13, %s726_s12 }
   0xe   : > { %s982_s20 = smov (%p37_p0, %s35_s20), 0  ;;  %p58_p5 = scmp.eq.s32.totalorder %s803_s18, 0 }
   0xf   : > { %967 = sst [smem:[#allocation12_spill]] %s982_s20  ;;  %p815_p4 = por %p52_p2, %p51_p1 }
  0x10   : > { %s39_s23 = ssub.s32 %s742_s16, %s982_s20  ;;  %p83_p6 = scmp.eq.s32.totalorder %s803_s18, 1 }
  0x11   : > { %p42_p7 = scmp.eq.s32.totalorder %s39_s23, 0  ;;  %p823_p8 = por %p58_p5, %p57_p3 }
  0x12   : > { %p827_p9 = por %p83_p6, %p51_p1  ;;  %p89_p10 = scmp.eq.s32.totalorder %s964_s19, 1 }
  0x13   : > { %s834_s26 = scalar_select %p42_p7, %s734_s14, %s44_s21  }
  0x14   : > { %p836_p11 = por %p89_p10, %p57_p3  ;;  %p475_p12 = scmp.ge.s32.totalorder %s746_s17, 2 }
  0x15   : > { %p520_p13 = scmp.lt.s32.totalorder %s746_s17, 2  ;;  %s165_s28 = sand.u32 1, %s734_s14  }
  0x16   : > { %s494_s29 = smul.u32 6, %s165_s28  ;;  %s972_s0 = sld [smem:[#allocation13_spill]] }
  0x17   : > { %s495_s30 = smul.u32 6, %s742_s16  ;;  %p507_p0 = pnand %p520_p13, %p815_p4 }
  0x18   : > { %s169_s7 = scalar_lea.vmem [#allocation2], %s494_s29  ;;  %p477_p1 = scmp.ge.s32.totalorder %s746_s17, 1 }
  0x19   : > { %s178_s8 = sshll.u32 %s169_s7, 4  ;;  %s166_s10 = scalar_lea.sflag [#allocation3], %s165_s28  ;;  %s179_s8 = int_to_ptr.vmem [resolvable:$true] %s178_s8 }
  0x1a   : > { %s748_s11 = smov 32   ;;  %s749_s21 = smov 2  }
  0x1b   : > { %p186_p2 = scmp.lt.s32.totalorder %s746_s17, 3 }
  0x1c   : > { %s175_s6 = scalar_lea.hbm %s972_s0, %s495_s30 }
  0x1d   : > { %s176_s9 = sshll.u32 %s175_s6, 4  ;;  %p187_p3 = pnand %p477_p1, %p186_p2  ;;  %s177_s9 = int_to_ptr.hbm [resolvable:$true] %s176_s9 }
  0x1e   : > { %509 = dma.hbm_to_vmem [thread:$0]  (!%p507_p0), %s177_s9, 96, %s179_s8, %s166_s10, %s748_s11, %s748_s11, %s749_s21  }
  0x1f   : > { %190 = sbr.rel (%p187_p3) target bundleno = 84 (0x54), region = 24  ;;  %s852_s22 = sand.u32 (!%p187_p3), 1, %s730_s13  }
  0x20   : > { %s496_s23 = smul.u32 (!%p187_p3), 6, %s852_s22  ;;  %s193_s29 = scalar_lea.sflag (!%p187_p3), [#allocation3], %s852_s22 }
  0x22   : > { %s196_s30 = scalar_lea.vmem (!%p187_p3), [#allocation2], %s496_s23 }
  0x24   : > { %713 = dma.done.wait (%p823_p8), %s193_s29, 96  }
  0x25   : > { %715 = vsyncadd (%p823_p8), %s193_s29, 4294967200  ;;  %s478_s28 = sshll.u32 %s852_s22, 1  ;;  %s864_s6 = scalar_lea.vmem [#allocation5], %s496_s23  ;;  %v230_v0 = vld [vmem:[%s196_s30] sm:$0x3] }
  0x26   : > { %s861_s4 = scalar_lea.vmem [#allocation6], %s478_s28  ;;  %s285_s7 = sshll.u32 %s864_s6, 4  ;;  %v480_v1 = vld [vmem:[%s196_s30 + $0x2] sm:$0x3]  ;;  %v481_v2 = vld [vmem:[%s196_s30 + $0x4] sm:$0x3]  ;;  %s872_s7 = int_to_ptr.vmem [resolvable:$true] %s285_s7 }
  0x27   : > { %s303_s5 = sshll.u32 %s861_s4, 4  ;;  %s488_s9 = sshll.u32 %s738_s15, 1  ;;  %v235_v3 = vmul.f32 0.299, %v230_v0  ;;  %v236_v4 = vmul.f32 0.587, %v480_v1  ;;  %s875_s5 = int_to_ptr.vmem [resolvable:$true] %s303_s5 }
  0x28   : > { %s301_s11 = scalar_lea.hbm %s962_s2, %s488_s9  ;;  %v238_v5 = vmul.f32 0.114, %v481_v2  ;;  %v246_v6 = vmul.f32 0.5, %v230_v0  ;;  %v247_v7 = vmul.f32 -0.419, %v480_v1  ;;  %s266_s21 = sand.u32 1, %s803_s18  }
  0x29   : > { %v249_v8 = vmul.f32 -0.081, %v481_v2  ;;  %v237_v9 = vadd.f32 %v236_v4, %v235_v3  ;;  %v240_v10 = vmul.f32 -0.169, %v230_v0  ;;  %v241_v11 = vmul.f32 -0.331, %v480_v1 }
  0x2a   : > { %v243_v12 = vmul.f32 0.5, %v481_v2  ;;  %s305_s23 = sshll.u32 %s301_s11, 4  ;;  %v248_v13 = vadd.f32 %v247_v7, %v246_v6  ;;  %s497_s29 = smul.u32 6, %s738_s15  ;;  %s306_s23 = int_to_ptr.hbm [resolvable:$true] %s305_s23 }
  0x2b   : > { %v239_v14 = vadd.f32 %v238_v5, %v237_v9  ;;  %v242_v15 = vadd.f32 %v241_v11, %v240_v10  ;;  %s493_s18 = sshll.u32 %s738_s15, 2  ;;  %s887_s11 = scalar_lea.sflag [#allocation7], %s266_s21 }
  0x2c   : > { %v250_v16 = vadd.f32 %v249_v8, %v248_v13  ;;  %s284_s9 = scalar_lea.hbm %s961_s1, %s497_s29  ;;  %s317_s8 = scalar_lea.hbm %s963_s3, %s493_s18 }
  0x2d   : > { %257 = vst [vmem:[%s861_s4] sm:$0x3] %v239_v14  ;;  %v244_v17 = vadd.f32 %v243_v12, %v242_v15  ;;  %s287_s24 = sshll.u32 %s284_s9, 4  ;;  %s618_s0 = sshra.s32 %s306_s23, 4  ;;  %s619_s0 = int_to_ptr.hbm [resolvable:$true] %s618_s0  ;;  %s288_s24 = int_to_ptr.hbm [resolvable:$true] %s287_s24 }
  0x2e   : > { %252 = vst [vmem:[%s864_s6] sm:$0x3] %v239_v14  ;;  %v251_v18 = vadd.f32 0.5, %v250_v16  ;;  %s620_s20 = scalar_lea.hbm %s619_s0, 2  ;;  %s624_s4 = scalar_lea.hbm %s962_s2, 4 }
  0x2f   : > { %p621_p4 = scmp.ne.s32.totalorder %s619_s0, %s620_s20  ;;  %p625_p7 = scmp.lt.s32.totalorder %s619_s0, %s962_s2 }
  0x30   : > { %p626_p8 = scmp.lt.s32.totalorder %s624_s4, %s620_s20 }
  0x31   : > { %p622_p5 = pnand %p621_p4, %p827_p9 }
  0x32   : > { %p627_p10 = por %p626_p8, %p625_p7 }
  0x33   : > { %p623_p6 = pneg %p622_p5 }
  0x35   : > { %p628_p13 = pnand %p627_p10, %p623_p6 }
  0x37   : > { %631 = shalt.err (!%p628_p13)
}
  0x38   : > { %501 = dma.vmem_to_hbm [thread:$0]  (%p827_p9), %s875_s5, 32, %s306_s23, %s887_s11   ;;  %v245_v19 = vadd.f32 0.5, %v244_v17  ;;  %482 = vst [vmem:[%s864_s6 + $0x2] sm:$0x3] %v251_v18 }
  0x39   : > { %s973_s19 = sshll.u32 %s852_s22, 2  ;;  %s320_s18 = sshll.u32 %s317_s8, 4  ;;  %s907_s18 = int_to_ptr.hbm [resolvable:$true] %s320_s18 }
  0x3a   : > { %s229_s21 = scalar_lea.vmem [#allocation8], %s973_s19  ;;  %483 = vst [vmem:[%s864_s6 + $0x4] sm:$0x3] %v245_v19  ;;  %s262_s0 = scalar_lea.sflag [#allocation4], %s852_s22 }
  0x3b   : > { %s318_s9 = sshll.u32 %s229_s21, 4  ;;  %258 = vst [vmem:[%s229_s21] sm:$0x3] %v251_v18  ;;  %s646_s20 = sshra.s32 %s288_s24, 4  ;;  %s905_s9 = int_to_ptr.vmem [resolvable:$true] %s318_s9  ;;  %s647_s20 = int_to_ptr.hbm [resolvable:$true] %s646_s20 }
  0x3c   : > { %484 = vst [vmem:[%s229_s21 + $0x2] sm:$0x3] %v245_v19  ;;  %s648_s10 = scalar_lea.hbm %s647_s20, 6  ;;  %s652_s8 = scalar_lea.hbm %s961_s1, 12 }
  0x3d   : > { %p649_p0 = scmp.ne.s32.totalorder %s647_s20, %s648_s10  ;;  %p653_p3 = scmp.lt.s32.totalorder %s647_s20, %s961_s1 }
  0x3e   : > { %p654_p4 = scmp.lt.s32.totalorder %s652_s8, %s648_s10 }
  0x3f   : > { %p650_p1 = pnand %p649_p0, %p827_p9 }
  0x40   : > { %p655_p5 = por %p654_p4, %p653_p3 }
  0x41   : > { %p651_p2 = pneg %p650_p1 }
  0x43   : > { %p656_p6 = pnand %p655_p5, %p651_p2 }
  0x45   : > { %659 = shalt.err (!%p656_p6)
}
  0x46   : > { %s750_s22 = smov 32   ;;  %s751_s15 = smov 2  }
  0x47   : > { %500 = dma.vmem_to_hbm [thread:$0]  (%p827_p9), %s872_s7, 96, %s288_s24, %s262_s0, %s750_s22, %s750_s22, %s751_s15  }
  0x48   : > { %s674_s4 = sshra.s32 %s907_s18, 4  ;;  %s680_s21 = scalar_lea.hbm %s963_s3, 8  ;;  %s675_s4 = int_to_ptr.hbm [resolvable:$true] %s674_s4 }
  0x49   : > { %s676_s30 = scalar_lea.hbm %s675_s4, 4  ;;  %p681_p13 = scmp.lt.s32.totalorder %s675_s4, %s963_s3 }
  0x4a   : > { %p677_p7 = scmp.ne.s32.totalorder %s675_s4, %s676_s30  ;;  %p682_p0 = scmp.lt.s32.totalorder %s680_s21, %s676_s30 }
  0x4c   : > { %p678_p8 = pnand %p677_p7, %p827_p9  ;;  %p683_p1 = por %p682_p0, %p681_p13 }
  0x4e   : > { %p679_p10 = pneg %p678_p8 }
  0x50   : > { %p684_p2 = pnand %p683_p1, %p679_p10 }
  0x52   : > { %687 = shalt.err (!%p684_p2)
}
  0x53   : > { %502 = dma.vmem_to_hbm [thread:$0]  (%p827_p9), %s905_s9, 64, %s907_s18, %s887_s11, %s750_s22, %s750_s22, %s751_s15  }
  0x54 PF: > { %s335_s7 = sand.u32 1, %s726_s12   ;;  %p511_p3 = pnand %p475_p12, %p836_p11 }
  0x55   : > { %s336_s24 = scalar_lea.sflag [#allocation4], %s335_s7 }
  0x56   : > { %p512_p4 = pneg %p511_p3 }
  0x58   : > { %717 = dma.done.wait (%p512_p4), %s336_s24, 96  }
  0x59   : > { %719 = vsyncadd (%p512_p4), %s336_s24, 4294967200  ;;  %s974_s0 = sadd.s32 4294967294, %s746_s17  }
  0x5a   : > { %s345_s5 = sand.u32 1, %s974_s0  }
  0x5b   : > { %s346_s25 = scalar_lea.sflag [#allocation7], %s345_s5 }
  0x5c   : > { %721 = dma.done.wait (%p512_p4), %s346_s25, 96  }
  0x5d   : > { %723 = vsyncadd (%p512_p4), %s346_s25, 4294967200  ;;  %s23_s17 = sadd.s32 1, %s746_s17   ;;  %s975_s27 = sld [smem:[#allocation12_spill]] }
  0x5e   : > { %p20_p9 = scmp.ge.s32.totalorder %s23_s17, 4   ;;  %s976_s12 = smov %s730_s13 }
  0x5f   : > { %s977_s13 = smov %s734_s14  ;;  %s978_s14 = smov %s834_s26 }
  0x60   : > { %s979_s15 = smov %s742_s16  ;;  %22 = sbr.rel (!%p20_p9) target bundleno = 10 (0xa), region = 106 }
  0x63   : > { %s980_s16 = smov %s975_s27 }
  0x65   :  { %362 = vsyncpa [#allocation3], 1 }
  0x66   :  { %364 = vsyncpa [#allocation3 + $0x1], 1 }
  0x67   :  { %365 = vsyncpa [#allocation4], 1 }
  0x68   :  { %367 = vsyncpa [#allocation4 + $0x1], 1 }
  0x69   :  { %368 = vsyncpa [#allocation7], 1 }
  0x6a   :  { %370 = vsyncpa [#allocation7 + $0x1], 1 }

</bundles_post_ra>
